<compile_context>
chip_gen: v7x
topology: tpu7x:2x2x1
jax: 0.10.0
libtpu: 0.0.40
codegen_flags: <defaults>
</compile_context>

<pallas_src>
import functools
import math
from typing import NamedTuple, Tuple

import jax
import jax.numpy as jnp
from jax.experimental import pallas as pl
from jax.experimental.pallas import tpu as pltpu

_NEG = -1e30  # effectively -inf for padded logit columns (avoids inf/nan arithmetic)


def _round_up(x, m):
    return (x + m - 1) // m * m


def _vmem_cap_bytes():
    """~80% of physical VMEM (generation-aware); conservative fallback fits v7x."""
    default = 48 * 1024 * 1024
    try:
        info = pltpu.get_tpu_info()
    except Exception:
        return default
    phys = getattr(info, "vmem_capacity_bytes", None)
    if not phys:
        return default
    return int(0.8 * int(phys))


# --------------------------------------------------------------------------- #
# Kernel body
# --------------------------------------------------------------------------- #
def _mlp_kernel(n_hidden, *refs):
    # refs = [x_ref, w1, b1, ..., w_out, b_out, out_ref]
    x_ref = refs[0]
    out_ref = refs[-1]
    params = refs[1:-1]

    compute_dtype = params[0].dtype
    # x arrives as f32 from HBM; cast on the VPU (hidden under DMA/MXU) instead of
    # materializing a padded bf16 copy in the wrapper.
    h = x_ref[...].astype(compute_dtype)

    for li in range(n_hidden):
        w = params[2 * li][...]
        b = params[2 * li + 1][...]  # f32, shape (1, out)
        acc = jnp.dot(h, w, preferred_element_type=jnp.float32) + b
        acc = jnp.maximum(acc, 0.0)  # ReLU in f32
        # TODO(synk): training-mode nn.Dropout would need pltpu.prng_seed/prng_random_bits
        # + inverted scaling; eval-mode dropout is the identity, implemented here.
        h = acc.astype(compute_dtype)  # back to bf16 for the next MXU op

    wo = params[2 * n_hidden][...]
    bo = params[2 * n_hidden + 1][...]
    logits = jnp.dot(h, wo, preferred_element_type=jnp.float32) + bo

    # log_softmax over the class axis; padded classes carry a -1e30 bias -> exp == 0.
    m = jnp.max(logits, axis=-1, keepdims=True)
    shifted = logits - m
    lse = jnp.log(jnp.sum(jnp.exp(shifted), axis=-1, keepdims=True))
    out_ref[...] = (shifted - lse).astype(out_ref.dtype)


# --------------------------------------------------------------------------- #
# One-time parameter preparation (pad + cast + cache)
# --------------------------------------------------------------------------- #
class PreparedClassifier(NamedTuple):
    flat_params: Tuple[jax.Array, ...]   # [w1, b1, ..., w_out, b_out] padded
    psizes: Tuple[int, ...]              # padded feature sizes per boundary
    in_dim: int
    out_dim: int
    n_layers: int
    compute_dtype: jnp.dtype


def prepare_params(weights, biases, *, compute_dtype=jnp.bfloat16):
    """Pad + cast parameters once; reuse on every forward (weights never change)."""
    compute_dtype = jnp.dtype(compute_dtype)
    n_layers = len(weights)
    in_dim = weights[0].shape[0]
    sizes = [in_dim] + [w.shape[1] for w in weights]

    k_align = 16 if compute_dtype == jnp.bfloat16 else 8
    psizes = []
    for idx, s in enumerate(sizes):
        if idx == 0:
            # Contraction (input/K) dim: only sublane alignment when << 128 ->
            # less x HBM traffic and less MXU zero-work for tiny input sizes.
            p = _round_up(s, k_align) if s < 128 else _round_up(s, 128)
        else:
            # N / output-feature dims stay lane-dense; use the full 2x256 MXU
            # width on v6e/v7x when the dim is already >= 256.
            p = _round_up(s, 256) if s >= 256 else _round_up(s, 128)
        psizes.append(p)

    flat = []
    for li, (w, b) in enumerate(zip(weights, biases)):
        pin, pout = psizes[li], psizes[li + 1]
        w_p = jnp.pad(w.astype(compute_dtype),
                      ((0, pin - w.shape[0]), (0, pout - w.shape[1])))
        b2 = b.astype(jnp.float32).reshape(1, -1)
        pad_val = _NEG if li == n_layers - 1 else 0.0
        b_p = jnp.pad(b2, ((0, 0), (0, pout - b2.shape[1])), constant_values=pad_val)
        flat.extend([w_p, b_p])
    flat = jax.block_until_ready(flat)   # materialize once, outside the hot path

    return PreparedClassifier(tuple(flat), tuple(psizes), in_dim,
                              weights[-1].shape[1], n_layers, compute_dtype)


# --------------------------------------------------------------------------- #
# Forward pass
# --------------------------------------------------------------------------- #
def classifier_forward(x, prepared: PreparedClassifier, *, batch_tile=None,
                       out_dtype=jnp.float32):
    """MLP classifier forward in one Pallas kernel.

    x:        (B, input_size) float32 (kept f32 in HBM; cast in-kernel).
    prepared: output of prepare_params() (padded bf16/f32 weights + f32 biases).
    """
    B, in_dim = x.shape
    assert in_dim == prepared.in_dim, "input feature size mismatch with prepared params"

    psizes = prepared.psizes
    in_pad, out_pad = psizes[0], psizes[-1]
    n_hidden = prepared.n_layers - 1
    compute_dtype = prepared.compute_dtype
    cdt_bytes = compute_dtype.itemsize
    out_dtype = jnp.dtype(out_dtype)
    out_bytes = out_dtype.itemsize
    x_bytes = x.dtype.itemsize

    # bf16 packs two rows per sublane -> 16-row alignment whenever bf16 is involved.
    tile_align = 16 if (compute_dtype == jnp.bfloat16 or out_dtype == jnp.bfloat16) else 8

    param_bytes = sum(int(a.size) * a.dtype.itemsize for a in prepared.flat_params)

    def tile_vmem_bytes(bt):
        io = 2 * bt * in_pad * x_bytes + 2 * bt * out_pad * out_bytes  # double-buffered
        act = 2 * bt * max(psizes) * (4 + cdt_bytes)                   # f32 acc + bf16 h
        return param_bytes + io + act

    vmem_cap = _vmem_cap_bytes()
    # TODO(synk): add a K/N-tiled weight pipeline (extra "arbitrary" grid axis + f32
    # VMEM accumulator) for layers whose weights alone exceed the VMEM budget (v7x 64 MiB/TC).

    if batch_tile is None:
        desired = 1024 if tile_vmem_bytes(1024) <= int(0.5 * vmem_cap) else 512
        batch_tile = min(desired, _round_up(B, tile_align))
        if B >= 4 * tile_align:
            # Keep grid >= 4 so each v7x TensorCore pipelines >= 2 steps.
            batch_tile = min(batch_tile, _round_up(-(-B // 4), tile_align))
        while tile_vmem_bytes(batch_tile) > int(0.85 * vmem_cap) and batch_tile > tile_align:
            batch_tile = max(tile_align, _round_up(batch_tile // 2, tile_align))
    assert batch_tile > 0 and batch_tile % tile_align == 0, \
        f"batch_tile must be a positive multiple of {tile_align}"

    B_pad = _round_up(B, batch_tile)
    grid = (B_pad // batch_tile,)

    # Only materialize a padded copy of x when actually required.
    if B_pad != B or in_pad != in_dim:
        x_in = jnp.pad(x, ((0, B_pad - B), (0, in_pad - in_dim)))
    else:
        x_in = x

    # ---- block specs ----
    in_specs = [pl.BlockSpec((batch_tile, in_pad), lambda i: (i, 0))]
    for arr in prepared.flat_params:
        # Grid-invariant params: single-buffer to halve resident parameter VMEM.
        in_specs.append(pl.BlockSpec(arr.shape, lambda i: (0, 0),
                                     pipeline_mode=pl.Buffered(1)))
    out_spec = pl.BlockSpec((batch_tile, out_pad), lambda i: (i, 0))

    vmem_limit = int(min(vmem_cap,
                         max(16 * 1024 * 1024, 1.4 * tile_vmem_bytes(batch_tile))))

    flops = 2 * B_pad * sum(psizes[i] * psizes[i + 1] for i in range(prepared.n_layers))
    cost = pl.CostEstimate(
        flops=int(flops),
        transcendentals=int(B_pad * (out_pad + 1)),  # exp per class + log per row
        bytes_accessed=int(x_in.nbytes) + int(B_pad * out_pad * out_bytes) + int(param_bytes),
    )

    kernel = functools.partial(_mlp_kernel, n_hidden)

    out_padded = pl.pallas_call(
        kernel,
        out_shape=jax.ShapeDtypeStruct((B_pad, out_pad), out_dtype),
        grid_spec=pltpu.PrefetchScalarGridSpec(
            num_scalar_prefetch=0,
            grid=grid,
            in_specs=in_specs,
            out_specs=out_spec,
        ),
        compiler_params=pltpu.CompilerParams(
            dimension_semantics=("parallel",),
            vmem_limit_bytes=vmem_limit,
        ),
        cost_estimate=cost,
    )(x_in, *prepared.flat_params)

    return out_padded[:B, :prepared.out_dim]


# --------------------------------------------------------------------------- #
# Reference + init
# --------------------------------------------------------------------------- #
def init_params(key, input_size, hidden_layers, output_size):
    """nn.Linear-style init: U(-1/sqrt(fan_in), 1/sqrt(fan_in)); weights stored (in, out)."""
    sizes = [input_size] + list(hidden_layers) + [output_size]
    weights, biases = [], []
    for i in range(len(sizes) - 1):
        fan_in, fan_out = sizes[i], sizes[i + 1]
        key, kw, kb = jax.random.split(key, 3)
        bound = 1.0 / math.sqrt(fan_in)
        weights.append(jax.random.uniform(kw, (fan_in, fan_out), jnp.float32, -bound, bound))
        biases.append(jax.random.uniform(kb, (fan_out,), jnp.float32, -bound, bound))
    return weights, biases


def reference_forward(x, weights, biases):
    h = x
    for w, b in zip(weights[:-1], biases[:-1]):
        h = jnp.maximum(h @ w + b, 0.0)
    logits = h @ weights[-1] + biases[-1]
    return jax.nn.log_softmax(logits, axis=1)


if __name__ == "__main__":
    key = jax.random.PRNGKey(0)

    input_size = 32
    hidden_layers = [64, 32]
    output_size = 16

    key, kx, kp = jax.random.split(key, 3)
    weights, biases = init_params(kp, input_size, hidden_layers, output_size)

    # One-time padded/cast parameter caches (hot path never re-pads weights).
    prepared_bf16 = prepare_params(weights, biases, compute_dtype=jnp.bfloat16)
    prepared_f32 = prepare_params(weights, biases, compute_dtype=jnp.float32)

    # Case 1: batch large enough for a >=4-step pipelined, megacore-shardable grid.
    x_big = jax.random.normal(kx, (512, input_size), dtype=jnp.float32)
    out_big = jax.block_until_ready(classifier_forward(x_big, prepared_bf16))
    ref_big = reference_forward(x_big, weights, biases)
    assert out_big.shape == (512, output_size)
    assert bool(jnp.all(jnp.isfinite(out_big))), "non-finite outputs"
    assert jnp.allclose(out_big, ref_big, atol=3e-2, rtol=3e-2), "bf16 kernel mismatch (big)"

    # Case 2: small, unaligned batch exercising the batch-padding path.
    key, kx2 = jax.random.split(key)
    x_small = jax.random.normal(kx2, (8, input_size), dtype=jnp.float32)
    out_small = jax.block_until_ready(classifier_forward(x_small, prepared_bf16))
    ref_small = reference_forward(x_small, weights, biases)
    assert out_small.shape == (8, output_size)
    assert jnp.allclose(out_small, ref_small, atol=3e-2, rtol=3e-2), "bf16 kernel mismatch (small)"

    # f32 compute path matches the JAX reference tightly (no x copy at all here:
    # batch and input dims are already aligned).
    out_f32 = jax.block_until_ready(classifier_forward(x_small, prepared_f32))
    assert jnp.allclose(out_f32, ref_small, atol=1e-4, rtol=1e-4), "f32 kernel mismatch"

    # bf16 output option: halves writeback bytes; values match the f32-output run
    # up to bf16 rounding.
    out_bf16 = jax.block_until_ready(
        classifier_forward(x_big, prepared_bf16, out_dtype=jnp.bfloat16))
    assert out_bf16.dtype == jnp.bfloat16
    assert jnp.allclose(out_bf16.astype(jnp.float32), out_big, atol=3e-2, rtol=3e-2), \
        "bf16-output mismatch"

    print("KERNEL_OK")
</pallas_src>

<mosaic_0001>
module attributes {stable_mosaic.version = 11 : i64} {
  func.func @_mlp_kernel(%arg0: i32, %arg1: memref<128x32xf32, #tpu.memory_space<vmem>>, %arg2: memref<32x128xbf16, #tpu.memory_space<vmem>>, %arg3: memref<1x128xf32, #tpu.memory_space<vmem>>, %arg4: memref<128x128xbf16, #tpu.memory_space<vmem>>, %arg5: memref<1x128xf32, #tpu.memory_space<vmem>>, %arg6: memref<128x128xbf16, #tpu.memory_space<vmem>>, %arg7: memref<1x128xf32, #tpu.memory_space<vmem>>, %arg8: memref<128x128xf32, #tpu.memory_space<vmem>>) attributes {dimension_semantics = [#tpu.dimension_semantics<parallel>], iteration_bounds = array<i64: 4>, scalar_prefetch = 0 : i64, scratch_operands = 0 : i64, tpu.core_type = #tpu.core_type<tc>, window_params = [{transform_indices = @transform_0, window_bounds = array<i64: 128, 32>}, {pipeline_mode = #tpu.pipeline_mode<synchronous>, transform_indices = @transform_1, window_bounds = array<i64: 32, 128>}, {pipeline_mode = #tpu.pipeline_mode<synchronous>, transform_indices = @transform_2, window_bounds = array<i64: 1, 128>}, {pipeline_mode = #tpu.pipeline_mode<synchronous>, transform_indices = @transform_3, window_bounds = array<i64: 128, 128>}, {pipeline_mode = #tpu.pipeline_mode<synchronous>, transform_indices = @transform_4, window_bounds = array<i64: 1, 128>}, {pipeline_mode = #tpu.pipeline_mode<synchronous>, transform_indices = @transform_5, window_bounds = array<i64: 128, 128>}, {pipeline_mode = #tpu.pipeline_mode<synchronous>, transform_indices = @transform_6, window_bounds = array<i64: 1, 128>}, {transform_indices = @transform_7, window_bounds = array<i64: 128, 128>}]} {
    %c0 = arith.constant 0 : index
    %c0_0 = arith.constant 0 : index
    %0 = vector.load %arg1[%c0, %c0_0] : memref<128x32xf32, #tpu.memory_space<vmem>>, vector<128x32xf32>
    %1 = arith.truncf %0 : vector<128x32xf32> to vector<128x32xbf16>
    %c0_1 = arith.constant 0 : index
    %c0_2 = arith.constant 0 : index
    %2 = vector.load %arg2[%c0_1, %c0_2] : memref<32x128xbf16, #tpu.memory_space<vmem>>, vector<32x128xbf16>
    %c0_3 = arith.constant 0 : index
    %c0_4 = arith.constant 0 : index
    %3 = vector.load %arg3[%c0_3, %c0_4] : memref<1x128xf32, #tpu.memory_space<vmem>>, vector<1x128xf32>
    %cst = arith.constant dense<0.000000e+00> : vector<128x128xf32>
    %4 = tpu.matmul %1, %2, %cst {dimension_numbers = #tpu.dot_dimension_numbers<[1], [0], [0], [1], [0, 0, 1, 1], [], []>} : vector<128x32xbf16>, vector<32x128xbf16>, vector<128x128xf32> -> vector<128x128xf32>
    %5 = vector.broadcast %3 : vector<1x128xf32> to vector<128x128xf32>
    %6 = arith.addf %4, %5 : vector<128x128xf32>
    %cst_5 = arith.constant 0.000000e+00 : f32
    %7 = vector.broadcast %cst_5 : f32 to vector<128x128xf32>
    %8 = arith.maximumf %6, %7 : vector<128x128xf32>
    %9 = arith.truncf %8 : vector<128x128xf32> to vector<128x128xbf16>
    %c0_6 = arith.constant 0 : index
    %c0_7 = arith.constant 0 : index
    %10 = vector.load %arg4[%c0_6, %c0_7] : memref<128x128xbf16, #tpu.memory_space<vmem>>, vector<128x128xbf16>
    %c0_8 = arith.constant 0 : index
    %c0_9 = arith.constant 0 : index
    %11 = vector.load %arg5[%c0_8, %c0_9] : memref<1x128xf32, #tpu.memory_space<vmem>>, vector<1x128xf32>
    %cst_10 = arith.constant dense<0.000000e+00> : vector<128x128xf32>
    %12 = tpu.matmul %9, %10, %cst_10 {dimension_numbers = #tpu.dot_dimension_numbers<[1], [0], [0], [1], [0, 0, 1, 1], [], []>} : vector<128x128xbf16>, vector<128x128xbf16>, vector<128x128xf32> -> vector<128x128xf32>
    %13 = vector.broadcast %11 : vector<1x128xf32> to vector<128x128xf32>
    %14 = arith.addf %12, %13 : vector<128x128xf32>
    %cst_11 = arith.constant 0.000000e+00 : f32
    %15 = vector.broadcast %cst_11 : f32 to vector<128x128xf32>
    %16 = arith.maximumf %14, %15 : vector<128x128xf32>
    %17 = arith.truncf %16 : vector<128x128xf32> to vector<128x128xbf16>
    %c0_12 = arith.constant 0 : index
    %c0_13 = arith.constant 0 : index
    %18 = vector.load %arg6[%c0_12, %c0_13] : memref<128x128xbf16, #tpu.memory_space<vmem>>, vector<128x128xbf16>
    %c0_14 = arith.constant 0 : index
    %c0_15 = arith.constant 0 : index
    %19 = vector.load %arg7[%c0_14, %c0_15] : memref<1x128xf32, #tpu.memory_space<vmem>>, vector<1x128xf32>
    %cst_16 = arith.constant dense<0.000000e+00> : vector<128x128xf32>
    %20 = tpu.matmul %17, %18, %cst_16 {dimension_numbers = #tpu.dot_dimension_numbers<[1], [0], [0], [1], [0, 0, 1, 1], [], []>} : vector<128x128xbf16>, vector<128x128xbf16>, vector<128x128xf32> -> vector<128x128xf32>
    %21 = vector.broadcast %19 : vector<1x128xf32> to vector<128x128xf32>
    %22 = arith.addf %20, %21 : vector<128x128xf32>
    %cst_17 = arith.constant dense<0xFF800000> : vector<128xf32>
    %23 = vector.multi_reduction <maximumf>, %22, %cst_17 [1] : vector<128x128xf32> to vector<128xf32>
    %24 = vector.shape_cast %23 : vector<128xf32> to vector<128x1xf32>
    %25 = vector.broadcast %24 : vector<128x1xf32> to vector<128x128xf32>
    %26 = arith.subf %22, %25 : vector<128x128xf32>
    %27 = math.exp %26 : vector<128x128xf32>
    %cst_18 = arith.constant dense<0.000000e+00> : vector<128xf32>
    %28 = vector.multi_reduction <add>, %27, %cst_18 [1] : vector<128x128xf32> to vector<128xf32>
    %29 = vector.shape_cast %28 : vector<128xf32> to vector<128x1xf32>
    %30 = math.log %29 : vector<128x1xf32>
    %31 = vector.broadcast %30 : vector<128x1xf32> to vector<128x128xf32>
    %32 = arith.subf %26, %31 : vector<128x128xf32>
    %c0_19 = arith.constant 0 : index
    %c0_20 = arith.constant 0 : index
    %33 = vector.load %arg8[%c0_19, %c0_20] : memref<128x128xf32, #tpu.memory_space<vmem>>, vector<128x128xf32>
    tpu.vector_store %arg8[%c0_19, %c0_20], %32 {strides = array<i32>} : memref<128x128xf32, #tpu.memory_space<vmem>>, vector<128x128xf32>,
    return
  }
  func.func @transform_0(%arg0: i32) -> (i32, i32) {
    %c0_i32 = arith.constant 0 : i32
    %c0_i32_0 = arith.constant 0 : i32
    return %arg0, %c0_i32 : i32, i32
  }
  func.func @transform_1(%arg0: i32) -> (i32, i32) {
    %c0_i32 = arith.constant 0 : i32
    %c0_i32_0 = arith.constant 0 : i32
    %c0_i32_1 = arith.constant 0 : i32
    return %c0_i32, %c0_i32_0 : i32, i32
  }
  func.func @transform_2(%arg0: i32) -> (i32, i32) {
    %c0_i32 = arith.constant 0 : i32
    %c0_i32_0 = arith.constant 0 : i32
    %c0_i32_1 = arith.constant 0 : i32
    return %c0_i32, %c0_i32_0 : i32, i32
  }
  func.func @transform_3(%arg0: i32) -> (i32, i32) {
    %c0_i32 = arith.constant 0 : i32
    %c0_i32_0 = arith.constant 0 : i32
    %c0_i32_1 = arith.constant 0 : i32
    return %c0_i32, %c0_i32_0 : i32, i32
  }
  func.func @transform_4(%arg0: i32) -> (i32, i32) {
    %c0_i32 = arith.constant 0 : i32
    %c0_i32_0 = arith.constant 0 : i32
    %c0_i32_1 = arith.constant 0 : i32
    return %c0_i32, %c0_i32_0 : i32, i32
  }
  func.func @transform_5(%arg0: i32) -> (i32, i32) {
    %c0_i32 = arith.constant 0 : i32
    %c0_i32_0 = arith.constant 0 : i32
    %c0_i32_1 = arith.constant 0 : i32
    return %c0_i32, %c0_i32_0 : i32, i32
  }
  func.func @transform_6(%arg0: i32) -> (i32, i32) {
    %c0_i32 = arith.constant 0 : i32
    %c0_i32_0 = arith.constant 0 : i32
    %c0_i32_1 = arith.constant 0 : i32
    return %c0_i32, %c0_i32_0 : i32, i32
  }
  func.func @transform_7(%arg0: i32) -> (i32, i32) {
    %c0_i32 = arith.constant 0 : i32
    %c0_i32_0 = arith.constant 0 : i32
    return %arg0, %c0_i32 : i32, i32
  }
}

</mosaic_0001>

<bundles_post_ra>
// kernel: tpu_custom_call.1
= control target key start
LH: loop header
LB: loop body
LE: loop exit
PB: predicated region body
PF: predicated region fallthrough
CT: control target
= control target key end

     0   :  { %12 = vsyncpa [#allocation3], 0  ;;  %s1782_s0 = inlined_call_operand.vmem [shape: f32[512,32], index: 0, kind: input, shape index: {}]   ;;  %s1783_s1 = inlined_call_operand.vmem [shape: bf16[32,128], index: 1, kind: input, shape index: {}]   ;;  %s1784_s2 = inlined_call_operand.vmem [shape: f32[1,128], index: 2, kind: input, shape index: {}]   ;;  %s1785_s3 = inlined_call_operand.vmem [shape: bf16[128,128], index: 3, kind: input, shape index: {}]   ;;  %s1786_s4 = inlined_call_operand.vmem [shape: f32[1,128], index: 4, kind: input, shape index: {}]   ;;  %s1787_s5 = inlined_call_operand.vmem [shape: bf16[128,128], index: 5, kind: input, shape index: {}]   ;;  %s1788_s6 = inlined_call_operand.vmem [shape: f32[1,128], index: 6, kind: input, shape index: {}]   ;;  %s1789_s7 = inlined_call_operand.hbm [shape: f32[512,128], index: 7, kind: output, shape index: {}]  }
   0x1   :  { %14 = vsyncpa [#allocation3 + $0x1], 0  ;;  %s1484_s24 = smov 0   ;;  %s1486_s25 = smov 0  }
   0x2   :  { %s1488_s26 = smov 0   ;;  %s1490_s27 = smov 0  }
   0x3 LB: > { %s1505_s28 = sadd.s32 4294967295, %s1439_s27   ;;  %s1086_s29 = sadd.s32 4294967294, %s1439_s27   ;;  %s1439_s27 = sphi %s1490_s27, %s1795_s27   ;;  %s1435_s26 = sphi %s1488_s26, %s1794_s26   ;;  %s1431_s25 = sphi %s1486_s25, %s1793_s25   ;;  %s1427_s24 = sphi %s1484_s24, %s1792_s24  }
   0x4   : > { %s1509_s30 = sadd.s32 1, %s1439_s27   ;;  %s179_s8 = sadd.s32 1, %s1435_s26 }
   0x5   : > { %s176_s9 = ssub.s32 %s1439_s27, %s1509_s30  ;;  %p189_p0 = scmp.ne.s32.totalorder %s1435_s26, %s1431_s25 }
   0x6   : > { %p177_p1 = scmp.eq.s32.totalorder %s176_s9, 0  ;;  %p190_p2 = scmp.eq.s32.totalorder %s1505_s28, 3 }
   0x7   : > { %p195_p3 = scmp.ne.s32.totalorder %s1431_s25, %s1427_s24  ;;  %p196_p4 = scmp.eq.s32.totalorder %s1086_s29, 3 }
   0x8   : > { %s1520_s10 = scalar_select %p177_p1, %s1435_s26, %s179_s8  }
   0x9   : > { %p1522_p5 = por %p190_p2, %p189_p0  ;;  %p1526_p6 = por %p196_p4, %p195_p3 }
   0xa   : > { %p1089_p7 = scmp.ge.s32.totalorder %s1439_s27, 1  ;;  %p241_p8 = scmp.lt.s32.totalorder %s1439_s27, 5 }
   0xc   : > { %p242_p9 = pnand %p1089_p7, %p241_p8 }
   0xd   : > { %v1295_v0 = vld [vmem:[%s1783_s1] sm:$0xff] (!%p242_p9)   ;;  %s1091_s15 = sshll.u32 (!%p242_p9), %s1505_s28, 4  ;;  %v1296_v1 = vld [vmem:[%s1783_s1 + $0x8] sm:$0xff] (!%p242_p9)   ;;  %v1299_v4 = vld [vmem:[%s1785_s3 + $0x10] sm:$0xff] (!%p242_p9)   ;;  %vm328_vm0 = vcmask (!%p242_p9), 261120   ;;  %s270_s18 = sand.u32 (!%p242_p9), 1, %s1431_s25  }
   0xe   : > { %245 = sbr.rel (%p242_p9) target bundleno = 1047 (0x417), region = 48  ;;  %p274_p10 = scmp.lt.s32.totalorder (!%p242_p9), %s1091_s15, 63  ;;  %1170 = vmatprep.subr.bf16.mxu0 (!%p242_p9), %v1295_v0  ;;  %v1297_v2 = vld [vmem:[%s1785_s3] sm:$0xff] (!%p242_p9)   ;;  %v1298_v3 = vld [vmem:[%s1785_s3 + $0x8] sm:$0xff] (!%p242_p9)   ;;  %v1300_v14 = vld [vmem:[%s1785_s3 + $0x18] sm:$0xff] (!%p242_p9)  }
   0xf   : > { %1171 = vmatpush3.bf16.msra.mxu0 (!%p242_p9), %v1295_v0  ;;  %1190 = vmatprep.subr.bf16.mxu1 (!%p242_p9), %v1297_v2  ;;  %v1301_v18 = vld [vmem:[%s1785_s3 + $0x20] sm:$0xff] (!%p242_p9)   ;;  %v1302_v22 = vld [vmem:[%s1785_s3 + $0x28] sm:$0xff] (!%p242_p9)   ;;  %v1303_v32 = vld [vmem:[%s1785_s3 + $0x30] sm:$0xff] (!%p242_p9)   ;;  %s1090_s19 = sshll.u32 (!%p242_p9), %s270_s18, 7  ;;  %s1127_s21 = sshll.u32 (!%p242_p9), %s1505_s28, 11 }
  0x10   : > { %1172 = vmatprep.subr.bf16.mxu0 (!%p242_p9), %v1296_v1  ;;  %1191 = vmatpush3.bf16.msra.mxu1 (!%p242_p9), %v1297_v2  ;;  %v1304_v33 = vld [vmem:[%s1785_s3 + $0x38] sm:$0xff] (!%p242_p9)   ;;  %v1305_v34 = vld [vmem:[%s1787_s5] sm:$0xff] (!%p242_p9)   ;;  %v1306_v35 = vld [vmem:[%s1787_s5 + $0x8] sm:$0xff] (!%p242_p9)   ;;  %s1697_s20 = scalar_lea.vmem (!%p242_p9), [#allocation2], %s1090_s19  ;;  %s1733_s9 = scalar_lea.hbm (!%p242_p9), %s1789_s7, %s1127_s21 }
  0x11   : > { %1192 = vmatprep.subr.bf16.mxu1 (!%p242_p9), %v1298_v3  ;;  %v1307_v36 = vld [vmem:[%s1787_s5 + $0x10] sm:$0xff] (!%p242_p9)   ;;  %v1308_v37 = vld [vmem:[%s1787_s5 + $0x18] sm:$0xff] (!%p242_p9)   ;;  %v1309_v38 = vld [vmem:[%s1787_s5 + $0x20] sm:$0xff] (!%p242_p9)   ;;  %s1741_s28 = scalar_lea.sflag (!%p242_p9), [#allocation3], %s270_s18  ;;  %s1441_s13 = smov (!%p242_p9), [#allocation2]  }
  0x12   : > { %v1310_v39 = vld [vmem:[%s1787_s5 + $0x28] sm:$0xff] (!%p242_p9)   ;;  %v1093_v40 = vld [vmem:[%s1784_s2] ss:$0 sm:$0xff] (!%p242_p9)  ;;  %s1381_s14 = sshll.u32 (!%p242_p9), %s1441_s13, 4  ;;  %s1382_s14 = int_to_ptr.vmem [resolvable:$false] %s1381_s14 }
  0x13   : > { %1173 = vmatpush3.bf16.msra.mxu0 (!%p242_p9), %v1296_v1 }
  0x14   : > { %1193 = vmatpush3.bf16.msra.mxu1 (!%p242_p9), %v1298_v3  ;;  %1222 = vmatprep.subr.bf16.mxu0 (!%p242_p9), %v1305_v34 }
  0x15   : > { %s1797_s15 = smov (!%p274_p10, %s1091_s15), 63  ;;  %1194 = vmatprep.subr.bf16.mxu1 %v1299_v4 }
  0x16   : > { %s1092_s22 = sshll.u32 %s1797_s15, 3  ;;  %s1383_s15 = scalar_lea.vmem %s1382_s14, 4096 }
  0x17   : > { %s1548_s8 = scalar_lea.vmem %s1782_s0, %s1092_s22  ;;  %s1024_s22 = sshll.u32 %s1697_s20, 4  ;;  %s1735_s22 = int_to_ptr.vmem [resolvable:$true] %s1024_s22 }
  0x18   : > { %v281_v5 = vld [vmem:[%s1548_s8] sm:$0xff]  ;;  %v282_v6 = vld [vmem:[%s1548_s8 + $0x8] sm:$0xff]  ;;  %v283_v7 = vld [vmem:[%s1548_s8 + $0x10] sm:$0xff]  ;;  %1195 = vmatpush3.bf16.msra.mxu1 %v1299_v4  ;;  %p1384_p0 = scmp.lt.s32.totalorder %s1735_s22, %s1382_s14 }
  0x19   : > { %v297_v8 = vpack.c.bf16 %v282_v6, %v281_v5  ;;  %v284_v9 = vld [vmem:[%s1548_s8 + $0x18] sm:$0xff]  ;;  %v285_v10 = vld [vmem:[%s1548_s8 + $0x20] sm:$0xff]  ;;  %v286_v11 = vld [vmem:[%s1548_s8 + $0x28] sm:$0xff]  ;;  %1196 = vmatprep.subr.bf16.mxu1 %v1300_v14 }
  0x1a   : > { %v298_v12 = vpack.c.bf16 %v284_v9, %v283_v7  ;;  %v299_v13 = vpack.c.bf16 %v286_v11, %v285_v10  ;;  %v287_v15 = vld [vmem:[%s1548_s8 + $0x30] sm:$0xff]  ;;  %v288_v16 = vld [vmem:[%s1548_s8 + $0x38] sm:$0xff]  ;;  %v289_v17 = vld [vmem:[%s1548_s8 + $0x40] sm:$0xff] }
  0x1b   : > { %1174 = vmatprep.mubr.msk.bf16.mxu0 %vm328_vm0, %v297_v8  ;;  %v290_v19 = vld [vmem:[%s1548_s8 + $0x48] sm:$0xff]  ;;  %v300_v20 = vpack.c.bf16 %v288_v16, %v287_v15  ;;  %v291_v23 = vld [vmem:[%s1548_s8 + $0x50] sm:$0xff]  ;;  %v292_v24 = vld [vmem:[%s1548_s8 + $0x58] sm:$0xff] }
  0x1c   : > { %1175 = vmatmul.mubr.msk.bf16.vlgmr.msra.gmra.mrb[0].mxu0 %vm328_vm0, %v298_v12  ;;  %v301_v21 = vpack.c.bf16 %v290_v19, %v289_v17  ;;  %1197 = vmatpush3.bf16.msra.mxu1 %v1300_v14  ;;  %v293_v25 = vld [vmem:[%s1548_s8 + $0x60] sm:$0xff]  ;;  %v294_v26 = vld [vmem:[%s1548_s8 + $0x68] sm:$0xff]  ;;  %v302_v27 = vpack.c.bf16 %v292_v24, %v291_v23  ;;  %v295_v29 = vld [vmem:[%s1548_s8 + $0x70] sm:$0xff] }
  0x1d   : > { %1178 = vmatprep.mubr.msk.bf16.mxu0 %vm328_vm0, %v299_v13  ;;  %1198 = vmatprep.subr.bf16.mxu1 %v1301_v18  ;;  %v303_v28 = vpack.c.bf16 %v294_v26, %v293_v25  ;;  %v296_v30 = vld [vmem:[%s1548_s8 + $0x78] sm:$0xff]  ;;  %s1377_s8 = scalar_lea.vmem %s1735_s22, 2048 }
  0x1e   : > { %v304_v31 = vpack.c.bf16 %v296_v30, %v295_v29  ;;  %1223 = vmatpush3.bf16.msra.mxu0 %v1305_v34  ;;  %v1312_v34 = vld [vmem:[%s1787_s5 + $0x38] sm:$0xff]   ;;  %p1378_p11 = scmp.ne.s32.totalorder %s1735_s22, %s1377_s8  ;;  %p1385_p1 = scmp.lt.s32.totalorder %s1383_s15, %s1377_s8 }
  0x1f   : > { %1224 = vmatprep.subr.bf16.mxu0 %v1306_v35 }
  0x20   : > { %1199 = vmatpush3.bf16.msra.mxu1 %v1301_v18  ;;  %p1379_p12 = pnand %p1378_p11, %p1522_p5  ;;  %p1386_p2 = por %p1385_p1, %p1384_p0 }
  0x21   : > { %1200 = vmatprep.subr.bf16.mxu1 %v1302_v22 }
  0x22   : > { %1225 = vmatpush3.bf16.msra.mxu0 %v1306_v35  ;;  %v1104_v35 = vld [vmem:[%s1786_s4] ss:$0 sm:$0xff]  ;;  %p1380_p13 = pneg %p1379_p12 }
  0x23   : > { %1226 = vmatprep.subr.bf16.mxu0 %v1307_v36 }
  0x24   : > { %1179 = vmatmul.mubr.msk.bf16.gmra.mrb[4].mxu0 %vm328_vm0, %v300_v20  ;;  %1201 = vmatpush3.bf16.msra.mxu1 %v1302_v22  ;;  %p1387_p3 = pnand %p1386_p2, %p1380_p13 }
  0x25   : > { %1182 = vmatprep.mubr.msk.bf16.mxu0 %vm328_vm0, %v301_v21  ;;  %1202 = vmatprep.subr.bf16.mxu1 %v1303_v32 }
  0x26   : > { %1227 = vmatpush3.bf16.msra.mxu0 %v1307_v36 }
  0x27   : > { %1228 = vmatprep.subr.bf16.mxu0 %v1308_v37 }
  0x28   : > { %1203 = vmatpush3.bf16.msra.mxu1 %v1303_v32 }
  0x29   : > { %1204 = vmatprep.subr.bf16.mxu1 %v1304_v33 }
  0x2a   : > { %1229 = vmatpush3.bf16.msra.mxu0 %v1308_v37 }
  0x2b   : > { %1230 = vmatprep.subr.bf16.mxu0 %v1309_v38 }
  0x2c   : > { %1183 = vmatmul.mubr.msk.bf16.gmra.mrb[8].mxu0 %vm328_vm0, %v302_v27  ;;  %1205 = vmatpush3.bf16.msra.mxu1 %v1304_v33  ;;  %v1311_v33 = vld [vmem:[%s1787_s5 + $0x30] sm:$0xff]  }
  0x2d   : > { %1186 = vmatprep.mubr.msk.bf16.mxu0 %vm328_vm0, %v303_v28 }
  0x2e   : > { %1231 = vmatpush3.bf16.msra.mxu0 %v1309_v38 }
  0x2f   : > { %1232 = vmatprep.subr.bf16.mxu0 %v1310_v39 }
  0x32   : > { %1233 = vmatpush3.bf16.msra.mxu0 %v1310_v39 }
  0x33   : > { %1234 = vmatprep.subr.bf16.mxu0 %v1311_v33 }
  0x34   : > { %1187 = vmatmul.mubr.msk.bf16.gmra.mrb[12].mxu0 %vm328_vm0, %v304_v31 }
  0x36   : > { %1235 = vmatpush3.bf16.msra.mxu0 %v1311_v33 }
  0x37   : > { %1236 = vmatprep.subr.bf16.mxu0 %v1312_v34 }
  0x3a   : > { %1237 = vmatpush3.bf16.msra.mxu0 %v1312_v34 }
  0xef   : > { %v1176_v41 = vpop.f32.mrb[0].mxu0 }
  0xf0   : > { %v396_v42 = vadd.f32 %v1176_v41, %v1093_v40  ;;  %v387_v43 = vpop.f32.mrb[1].mxu0 }
  0xf1   : > { %v388_v44 = vadd.f32 %v1093_v40, %v387_v43  ;;  %v1177_v45 = vpop.f32.mrb[2].mxu0 }
  0xf2   : > { %v399_v46 = vadd.f32 %v1177_v45, %v1093_v40  ;;  %v390_v47 = vpop.f32.mrb[3].mxu0  ;;  %v452_v49 = vmax.f32 %v396_v42, 0.0 }
  0xf3   : > { %v391_v48 = vadd.f32 %v1093_v40, %v390_v47  ;;  %v450_v51 = vmax.f32 %v388_v44, 0.0 }
  0xf4   : > { %v453_v50 = vmax.f32 %v399_v46, 0.0 }
  0xf5   : > { %v451_v52 = vmax.f32 %v391_v48, 0.0 }
  0xf6   : > { %v467_v53 = vpack.c.bf16 %v453_v50, %v452_v49 }
  0xf7   : > { %v1180_v54 = vpop.f32.mrb[4].mxu0  ;;  %v466_v55 = vpack.c.bf16 %v451_v52, %v450_v51 }
  0xf8   : > { %v412_v56 = vadd.f32 %v1180_v54, %v1093_v40  ;;  %v403_v57 = vpop.f32.mrb[5].mxu0 }
  0xf9   : > { %v404_v58 = vadd.f32 %v1093_v40, %v403_v57  ;;  %v1181_v59 = vpop.f32.mrb[6].mxu0  ;;  %1206 = vmatprep.mubr.bf16.mxu1 %v466_v55 }
  0xfa   : > { %v456_v60 = vmax.f32 %v412_v56, 0.0  ;;  %v415_v61 = vadd.f32 %v1181_v59, %v1093_v40  ;;  %v406_v62 = vpop.f32.mrb[7].mxu0  ;;  %1207 = vmatmul.mubr.bf16.vlgmr.msra.gmra.mrb[0].mxu1 %v467_v53 }
  0xfb   : > { %v407_v63 = vadd.f32 %v1093_v40, %v406_v62  ;;  %v454_v1 = vmax.f32 %v404_v58, 0.0 }
  0xfc   : > { %v457_v0 = vmax.f32 %v415_v61, 0.0 }
  0xfd   : > { %v455_v2 = vmax.f32 %v407_v63, 0.0 }
  0xfe   : > { %v469_v3 = vpack.c.bf16 %v457_v0, %v456_v60 }
  0xff   : > { %v468_v4 = vpack.c.bf16 %v455_v2, %v454_v1  ;;  %v1184_v5 = vpop.f32.mrb[8].mxu0 }
 0x100   : > { %v428_v6 = vadd.f32 %v1184_v5, %v1093_v40  ;;  %v419_v7 = vpop.f32.mrb[9].mxu0 }
 0x101   : > { %v420_v8 = vadd.f32 %v1093_v40, %v419_v7  ;;  %v1185_v9 = vpop.f32.mrb[10].mxu0  ;;  %1210 = vmatprep.mubr.bf16.mxu1 %v468_v4 }
 0x102   : > { %v460_v10 = vmax.f32 %v428_v6, 0.0  ;;  %v431_v11 = vadd.f32 %v1185_v9, %v1093_v40  ;;  %v422_v12 = vpop.f32.mrb[11].mxu0  ;;  %1211 = vmatmul.mubr.bf16.gmra.mrb[4].mxu1 %v469_v3 }
 0x103   : > { %v423_v13 = vadd.f32 %v1093_v40, %v422_v12  ;;  %v458_v15 = vmax.f32 %v420_v8, 0.0 }
 0x104   : > { %v461_v14 = vmax.f32 %v431_v11, 0.0 }
 0x105   : > { %v459_v16 = vmax.f32 %v423_v13, 0.0 }
 0x106   : > { %v471_v17 = vpack.c.bf16 %v461_v14, %v460_v10 }
 0x107   : > { %v470_v18 = vpack.c.bf16 %v459_v16, %v458_v15  ;;  %v1188_v19 = vpop.f32.mrb[12].mxu0 }
 0x108   : > { %v444_v20 = vadd.f32 %v1188_v19, %v1093_v40  ;;  %v435_v21 = vpop.f32.mrb[13].mxu0 }
 0x109   : > { %v436_v22 = vadd.f32 %v1093_v40, %v435_v21  ;;  %v1189_v23 = vpop.f32.mrb[14].mxu0  ;;  %1214 = vmatprep.mubr.bf16.mxu1 %v470_v18 }
 0x10a   : > { %v464_v24 = vmax.f32 %v444_v20, 0.0  ;;  %v447_v25 = vadd.f32 %v1189_v23, %v1093_v40  ;;  %v438_v26 = vpop.f32.mrb[15].mxu0  ;;  %1215 = vmatmul.mubr.bf16.gmra.mrb[8].mxu1 %v471_v17 }
 0x10b   : > { %v439_v27 = vadd.f32 %v1093_v40, %v438_v26  ;;  %v462_v29 = vmax.f32 %v436_v22, 0.0 }
 0x10c   : > { %v465_v28 = vmax.f32 %v447_v25, 0.0 }
 0x10d   : > { %v463_v30 = vmax.f32 %v439_v27, 0.0 }
 0x10e   : > { %v473_v31 = vpack.c.bf16 %v465_v28, %v464_v24  ;;  %v1113_v28 = vld [vmem:[%s1788_s6] ss:$0 sm:$0xff] }
 0x10f   : > { %v472_v32 = vpack.c.bf16 %v463_v30, %v462_v29 }
 0x111   : > { %1218 = vmatprep.mubr.bf16.mxu1 %v472_v32 }
 0x112   : > { %1219 = vmatmul.mubr.bf16.gmra.mrb[12].mxu1 %v473_v31 }
 0x1cd   : > { %v1208_v36 = vpop.f32.mrb[0].mxu1 }
 0x1ce   : > { %v588_v37 = vadd.f32 %v1208_v36, %v1104_v35  ;;  %v579_v38 = vpop.f32.mrb[1].mxu1 }
 0x1cf   : > { %v580_v39 = vadd.f32 %v1104_v35, %v579_v38  ;;  %v1209_v40 = vpop.f32.mrb[2].mxu1 }
 0x1d0   : > { %v591_v41 = vadd.f32 %v1209_v40, %v1104_v35  ;;  %v582_v42 = vpop.f32.mrb[3].mxu1  ;;  %v644_v44 = vmax.f32 %v588_v37, 0.0 }
 0x1d1   : > { %v583_v43 = vadd.f32 %v1104_v35, %v582_v42  ;;  %v642_v46 = vmax.f32 %v580_v39, 0.0 }
 0x1d2   : > { %v645_v45 = vmax.f32 %v591_v41, 0.0 }
 0x1d3   : > { %v643_v47 = vmax.f32 %v583_v43, 0.0 }
 0x1d4   : > { %v659_v48 = vpack.c.bf16 %v645_v45, %v644_v44 }
 0x1d5   : > { %v658_v49 = vpack.c.bf16 %v643_v47, %v642_v46  ;;  %v1212_v50 = vpop.f32.mrb[4].mxu1 }
 0x1d6   : > { %v604_v51 = vadd.f32 %v1212_v50, %v1104_v35  ;;  %v595_v52 = vpop.f32.mrb[5].mxu1 }
 0x1d7   : > { %v596_v53 = vadd.f32 %v1104_v35, %v595_v52  ;;  %v1213_v54 = vpop.f32.mrb[6].mxu1  ;;  %1238 = vmatprep.mubr.bf16.mxu0 %v658_v49 }
 0x1d8   : > { %v607_v55 = vadd.f32 %v1213_v54, %v1104_v35  ;;  %v598_v56 = vpop.f32.mrb[7].mxu1  ;;  %1239 = vmatmul.mubr.bf16.vlgmr.msra.gmra.mrb[16].mxu0 %v659_v48  ;;  %v648_v58 = vmax.f32 %v604_v51, 0.0 }
 0x1d9   : > { %v599_v57 = vadd.f32 %v1104_v35, %v598_v56  ;;  %v646_v60 = vmax.f32 %v596_v53, 0.0 }
 0x1da   : > { %v649_v59 = vmax.f32 %v607_v55, 0.0 }
 0x1db   : > { %v647_v61 = vmax.f32 %v599_v57, 0.0 }
 0x1dc   : > { %v661_v62 = vpack.c.bf16 %v649_v59, %v648_v58 }
 0x1dd   : > { %v660_v63 = vpack.c.bf16 %v647_v61, %v646_v60  ;;  %v1216_v0 = vpop.f32.mrb[8].mxu1 }
 0x1de   : > { %v620_v1 = vadd.f32 %v1216_v0, %v1104_v35  ;;  %v611_v2 = vpop.f32.mrb[9].mxu1 }
 0x1df   : > { %v612_v3 = vadd.f32 %v1104_v35, %v611_v2  ;;  %v1217_v4 = vpop.f32.mrb[10].mxu1  ;;  %1242 = vmatprep.mubr.bf16.mxu0 %v660_v63 }
 0x1e0   : > { %v623_v5 = vadd.f32 %v1217_v4, %v1104_v35  ;;  %v614_v6 = vpop.f32.mrb[11].mxu1  ;;  %1243 = vmatmul.mubr.bf16.gmra.mrb[20].mxu0 %v661_v62  ;;  %v652_v8 = vmax.f32 %v620_v1, 0.0 }
 0x1e1   : > { %v615_v7 = vadd.f32 %v1104_v35, %v614_v6  ;;  %v650_v10 = vmax.f32 %v612_v3, 0.0 }
 0x1e2   : > { %v653_v9 = vmax.f32 %v623_v5, 0.0 }
 0x1e3   : > { %v651_v11 = vmax.f32 %v615_v7, 0.0 }
 0x1e4   : > { %v663_v12 = vpack.c.bf16 %v653_v9, %v652_v8 }
 0x1e5   : > { %v662_v13 = vpack.c.bf16 %v651_v11, %v650_v10  ;;  %v1220_v14 = vpop.f32.mrb[12].mxu1 }
 0x1e6   : > { %v636_v15 = vadd.f32 %v1220_v14, %v1104_v35  ;;  %v627_v16 = vpop.f32.mrb[13].mxu1 }
 0x1e7   : > { %v628_v17 = vadd.f32 %v1104_v35, %v627_v16  ;;  %v1221_v18 = vpop.f32.mrb[14].mxu1  ;;  %1246 = vmatprep.mubr.bf16.mxu0 %v662_v13 }
 0x1e8   : > { %v639_v19 = vadd.f32 %v1221_v18, %v1104_v35  ;;  %v630_v20 = vpop.f32.mrb[15].mxu1  ;;  %1247 = vmatmul.mubr.bf16.gmra.mrb[24].mxu0 %v663_v12  ;;  %v656_v22 = vmax.f32 %v636_v15, 0.0 }
 0x1e9   : > { %v631_v21 = vadd.f32 %v1104_v35, %v630_v20  ;;  %v654_v24 = vmax.f32 %v628_v17, 0.0 }
 0x1ea   : > { %v657_v23 = vmax.f32 %v639_v19, 0.0 }
 0x1eb   : > { %v655_v25 = vmax.f32 %v631_v21, 0.0 }
 0x1ec   : > { %v665_v26 = vpack.c.bf16 %v657_v23, %v656_v22 }
 0x1ed   : > { %v664_v27 = vpack.c.bf16 %v655_v25, %v654_v24 }
 0x1ef   : > { %1250 = vmatprep.mubr.bf16.mxu0 %v664_v27 }
 0x1f0   : > { %1251 = vmatmul.mubr.bf16.gmra.mrb[28].mxu0 %v665_v26 }
 0x2ab   : > { %v1240_v29 = vpop.f32.mrb[16].mxu0 }
 0x2ac   : > { %v780_v30 = vadd.f32 %v1240_v29, %v1113_v28  ;;  %v771_v31 = vpop.f32.mrb[17].mxu0 }
 0x2ad   : > { %v772_v32 = vadd.f32 %v1113_v28, %v771_v31  ;;  %v1241_v33 = vpop.f32.mrb[18].mxu0 }
 0x2ae   : > { %838 = vmax.xlane.f32.xlu1 %v780_v30  ;;  %v774_v34 = vpop.f32.mrb[19].mxu0  ;;  %v783_v35 = vadd.f32 %v1241_v33, %v1113_v28 }
 0x2af   : > { %834 = vmax.xlane.f32.xlu0 %v772_v32  ;;  %v775_v36 = vadd.f32 %v1113_v28, %v774_v34 }
 0x2b2   : > { %840 = vmax.xlane.f32.xlu1 %v783_v35 }
 0x2b3   : > { %v1244_v37 = vpop.f32.mrb[20].mxu0  ;;  %836 = vmax.xlane.f32.xlu0 %v775_v36 }
 0x2b4   : > { %v796_v38 = vadd.f32 %v1244_v37, %v1113_v28  ;;  %v787_v39 = vpop.f32.mrb[21].mxu0 }
 0x2b5   : > { %v1245_v40 = vpop.f32.mrb[22].mxu0  ;;  %v788_v43 = vadd.f32 %v1113_v28, %v787_v39 }
 0x2b6   : > { %v799_v41 = vadd.f32 %v1245_v40, %v1113_v28  ;;  %v790_v42 = vpop.f32.mrb[23].mxu0 }
 0x2b7   : > { %846 = vmax.xlane.f32.xlu0 %v796_v38  ;;  %v791_v44 = vadd.f32 %v1113_v28, %v790_v42 }
 0x2b8   : > { %848 = vmax.xlane.f32.xlu1 %v799_v41 }
 0x2bb   : > { %v1248_v45 = vpop.f32.mrb[24].mxu0  ;;  %842 = vmax.xlane.f32.xlu0 %v788_v43 }
 0x2bc   : > { %v812_v46 = vadd.f32 %v1248_v45, %v1113_v28  ;;  %v803_v47 = vpop.f32.mrb[25].mxu0  ;;  %844 = vmax.xlane.f32.xlu1 %v791_v44 }
 0x2bd   : > { %v1249_v48 = vpop.f32.mrb[26].mxu0  ;;  %v804_v51 = vadd.f32 %v1113_v28, %v803_v47 }
 0x2be   : > { %v815_v49 = vadd.f32 %v1249_v48, %v1113_v28  ;;  %v806_v50 = vpop.f32.mrb[27].mxu0 }
 0x2bf   : > { %854 = vmax.xlane.f32.xlu0 %v812_v46  ;;  %v1625_v52 = vadd.f32 %v1113_v28, %v806_v50 }
 0x2c0   : > { %856 = vmax.xlane.f32.xlu1 %v815_v49 }
 0x2c3   : > { %v1252_v53 = vpop.f32.mrb[28].mxu0  ;;  %850 = vmax.xlane.f32.xlu0 %v804_v51 }
 0x2c4   : > { %v819_v54 = vpop.f32.mrb[29].mxu0  ;;  %852 = vmax.xlane.f32.xlu1 %v1625_v52  ;;  %v1633_v59 = vadd.f32 %v1252_v53, %v1113_v28 }
 0x2c5   : > { %v1628_v55 = vadd.f32 %v1113_v28, %v819_v54  ;;  %v1253_v56 = vpop.f32.mrb[30].mxu0 }
 0x2c6   : > { %v822_v57 = vpop.f32.mrb[31].mxu0  ;;  %v1636_v60 = vadd.f32 %v1253_v56, %v1113_v28 }
 0x2c7   : > { %v1630_v58 = vadd.f32 %v1113_v28, %v822_v57  ;;  %858 = vmax.xlane.f32.xlu0 %v1628_v55 }
 0x2c9   : > { %860 = vmax.xlane.f32.xlu1 %v1630_v58 }
 0x2cb   : > { %862 = vmax.xlane.f32.xlu0 %v1633_v59 }
 0x2cd   : > { %864 = vmax.xlane.f32.xlu1 %v1636_v60 }
 0x33b   : > { %v839_v61 = vpop.xlane.xlu1 %838 }
 0x33c   : > { %v1640_v62 = vsub.f32 %v780_v30, %v839_v61  ;;  %v835_v63 = vpop.xlane.xlu0 %834 }
 0x33d   : > { %v1642_v0 = vsub.f32 %v772_v32, %v835_v63 }
 0x33e   : > { %v886_v1 = vmul.f32 1.442695, %v1640_v62 }
 0x33f   : > { %v882_v2 = vmul.f32 1.442695, %v1642_v0  ;;  %v841_v3 = vpop.xlane.xlu1 %840 }
 0x340   : > { %1313 = vpow2.f32 %v886_v1  ;;  %v1646_v4 = vsub.f32 %v783_v35, %v841_v3  ;;  %v837_v5 = vpop.xlane.xlu0 %836 }
 0x341   : > { %v1648_v6 = vsub.f32 %v775_v36, %v837_v5  ;;  %1315 = vpow2.f32 %v882_v2 }
 0x342   : > { %v888_v7 = vmul.f32 1.442695, %v1646_v4 }
 0x343   : > { %v884_v8 = vmul.f32 1.442695, %v1648_v6 }
 0x344   : > { %1317 = vpow2.f32 %v888_v7  ;;  %v847_v9 = vpop.xlane.xlu0 %846 }
 0x345   : > { %v1652_v10 = vsub.f32 %v796_v38, %v847_v9  ;;  %v849_v11 = vpop.xlane.xlu1 %848  ;;  %1319 = vpow2.f32 %v884_v8 }
 0x346   : > { %v1654_v12 = vsub.f32 %v799_v41, %v849_v11 }
 0x347   : > { %v894_v13 = vmul.f32 1.442695, %v1652_v10 }
 0x348   : > { %v896_v14 = vmul.f32 1.442695, %v1654_v12  ;;  %v843_v15 = vpop.xlane.xlu0 %842 }
 0x349   : > { %1321 = vpow2.f32 %v894_v13  ;;  %v1658_v16 = vsub.f32 %v788_v43, %v843_v15  ;;  %v845_v17 = vpop.xlane.xlu1 %844 }
 0x34a   : > { %v1314_v18 = vpop.eup %1313  ;;  %v1660_v19 = vsub.f32 %v791_v44, %v845_v17  ;;  %1323 = vpow2.f32 %v896_v14 }
 0x34b   : > { %v890_v20 = vmul.f32 1.442695, %v1658_v16  ;;  %918 = vadd.xlane.f32.xlu0 %v1314_v18  ;;  %v1316_v23 = vpop.eup %1315 }
 0x34c   : > { %v892_v21 = vmul.f32 1.442695, %v1660_v19  ;;  %v855_v22 = vpop.xlane.xlu0 %854 }
 0x34d   : > { %1325 = vpow2.f32 %v890_v20  ;;  %v1664_v24 = vsub.f32 %v812_v46, %v855_v22  ;;  %v857_v25 = vpop.xlane.xlu1 %856 }
 0x34e   : > { %v1318_v26 = vpop.eup %1317  ;;  %v1666_v27 = vsub.f32 %v815_v49, %v857_v25  ;;  %1327 = vpow2.f32 %v892_v21 }
 0x34f   : > { %v902_v28 = vmul.f32 1.442695, %v1664_v24  ;;  %920 = vadd.xlane.f32.xlu1 %v1318_v26  ;;  %914 = vadd.xlane.f32.xlu0 %v1316_v23  ;;  %v1320_v33 = vpop.eup %1319 }
 0x350   : > { %v904_v29 = vmul.f32 1.442695, %v1666_v27  ;;  %v851_v30 = vpop.xlane.xlu0 %850 }
 0x351   : > { %1329 = vpow2.f32 %v902_v28  ;;  %v1670_v31 = vsub.f32 %v804_v51, %v851_v30  ;;  %v853_v32 = vpop.xlane.xlu1 %852 }
 0x352   : > { %v1673_v34 = vsub.f32 %v1625_v52, %v853_v32  ;;  %1331 = vpow2.f32 %v904_v29 }
 0x353   : > { %v1322_v35 = vpop.eup %1321  ;;  %v898_v36 = vmul.f32 1.442695, %v1670_v31  ;;  %916 = vadd.xlane.f32.xlu1 %v1320_v33 }
 0x354   : > { %v900_v37 = vmul.f32 1.442695, %v1673_v34  ;;  %926 = vadd.xlane.f32.xlu0 %v1322_v35  ;;  %v859_v38 = vpop.xlane.xlu0 %858  ;;  %v1324_v40 = vpop.eup %1323 }
 0x355   : > { %1333 = vpow2.f32 %v898_v36  ;;  %v1678_v39 = vsub.f32 %v1628_v55, %v859_v38 }
 0x356   : > { %v861_v41 = vpop.xlane.xlu1 %860  ;;  %1335 = vpow2.f32 %v900_v37 }
 0x357   : > { %v1326_v42 = vpop.eup %1325  ;;  %v906_v43 = vmul.f32 1.442695, %v1678_v39  ;;  %v1682_v44 = vsub.f32 %v1630_v58, %v861_v41  ;;  %928 = vadd.xlane.f32.xlu1 %v1324_v40 }
 0x358   : > { %922 = vadd.xlane.f32.xlu0 %v1326_v42  ;;  %v863_v45 = vpop.xlane.xlu0 %862  ;;  %v1328_v48 = vpop.eup %1327 }
 0x359   : > { %1337 = vpow2.f32 %v906_v43  ;;  %v908_v46 = vmul.f32 1.442695, %v1682_v44  ;;  %v1686_v47 = vsub.f32 %v1633_v59, %v863_v45 }
 0x35a   : > { %v865_v49 = vpop.xlane.xlu1 %864 }
 0x35b   : > { %v1330_v50 = vpop.eup %1329  ;;  %1339 = vpow2.f32 %v908_v46  ;;  %v910_v51 = vmul.f32 1.442695, %v1686_v47  ;;  %v1690_v52 = vsub.f32 %v1636_v60, %v865_v49  ;;  %924 = vadd.xlane.f32.xlu1 %v1328_v48 }
 0x35c   : > { %934 = vadd.xlane.f32.xlu0 %v1330_v50  ;;  %v1332_v54 = vpop.eup %1331 }
 0x35d   : > { %1341 = vpow2.f32 %v910_v51  ;;  %v912_v53 = vmul.f32 1.442695, %v1690_v52 }
 0x35f   : > { %v1334_v55 = vpop.eup %1333  ;;  %1343 = vpow2.f32 %v912_v53  ;;  %936 = vadd.xlane.f32.xlu1 %v1332_v54 }
 0x360   : > { %930 = vadd.xlane.f32.xlu0 %v1334_v55  ;;  %v1336_v56 = vpop.eup %1335 }
 0x363   : > { %v1338_v57 = vpop.eup %1337  ;;  %932 = vadd.xlane.f32.xlu1 %v1336_v56 }
 0x364   : > { %938 = vadd.xlane.f32.xlu0 %v1338_v57 }
 0x365   : > { %v1340_v58 = vpop.eup %1339 }
 0x367   : > { %v1342_v59 = vpop.eup %1341  ;;  %940 = vadd.xlane.f32.xlu1 %v1340_v58 }
 0x368   : > { %942 = vadd.xlane.f32.xlu0 %v1342_v59 }
 0x369   : > { %v1344_v60 = vpop.eup %1343 }
 0x36b   : > { %944 = vadd.xlane.f32.xlu1 %v1344_v60 }
 0x3d8   : > { %v919_v61 = vpop.xlane.xlu0 %918 }
 0x3d9   : > { %1345 = vlog2.f32 %v919_v61 }
 0x3dc   : > { %v921_v63 = vpop.xlane.xlu1 %920  ;;  %v915_v1 = vpop.xlane.xlu0 %914 }
 0x3dd   : > { %1347 = vlog2.f32 %v921_v63 }
 0x3de   : > { %1349 = vlog2.f32 %v915_v1 }
 0x3e0   : > { %v917_v2 = vpop.xlane.xlu1 %916 }
 0x3e1   : > { %1351 = vlog2.f32 %v917_v2  ;;  %v927_v3 = vpop.xlane.xlu0 %926 }
 0x3e2   : > { %1353 = vlog2.f32 %v927_v3 }
 0x3e3   : > { %v1346_v5 = vpop.eup %1345 }
 0x3e4   : > { %v951_v7 = vmul.f32 0.6931472, %v1346_v5  ;;  %v929_v8 = vpop.xlane.xlu1 %928 }
 0x3e5   : > { %1355 = vlog2.f32 %v929_v8  ;;  %v923_v9 = vpop.xlane.xlu0 %922 }
 0x3e6   : > { %v980_v11 = vsub.f32 %v1640_v62, %v951_v7  ;;  %1357 = vlog2.f32 %v923_v9 }
 0x3e7   : > { %v1348_v13 = vpop.eup %1347 }
 0x3e8   : > { %v1350_v14 = vpop.eup %1349  ;;  %996 = vst [vmem:[%s1697_s20 + $0x10] sm:$0xff] %v980_v11  ;;  %v953_v15 = vmul.f32 0.6931472, %v1348_v13  ;;  %v925_v17 = vpop.xlane.xlu1 %924 }
 0x3e9   : > { %v947_v18 = vmul.f32 0.6931472, %v1350_v14  ;;  %1359 = vlog2.f32 %v925_v17  ;;  %v935_v20 = vpop.xlane.xlu0 %934 }
 0x3ea   : > { %v981_v21 = vsub.f32 %v1646_v4, %v953_v15  ;;  %1361 = vlog2.f32 %v935_v20 }
 0x3eb   : > { %v1352_v22 = vpop.eup %1351  ;;  %v978_v62 = vsub.f32 %v1642_v0, %v947_v18 }
 0x3ec   : > { %v1354_v23 = vpop.eup %1353  ;;  %997 = vst [vmem:[%s1697_s20 + $0x18] sm:$0xff] %v981_v21  ;;  %v949_v25 = vmul.f32 0.6931472, %v1352_v22  ;;  %v937_v26 = vpop.xlane.xlu1 %936 }
 0x3ed   : > { %994 = vst [vmem:[%s1697_s20] sm:$0xff] %v978_v62  ;;  %v959_v28 = vmul.f32 0.6931472, %v1354_v23  ;;  %1363 = vlog2.f32 %v937_v26  ;;  %v931_v29 = vpop.xlane.xlu0 %930 }
 0x3ee   : > { %v979_v30 = vsub.f32 %v1648_v6, %v949_v25  ;;  %1365 = vlog2.f32 %v931_v29 }
 0x3ef   : > { %v1356_v32 = vpop.eup %1355  ;;  %v984_v4 = vsub.f32 %v1652_v10, %v959_v28 }
 0x3f0   : > { %v1358_v33 = vpop.eup %1357  ;;  %995 = vst [vmem:[%s1697_s20 + $0x8] sm:$0xff] %v979_v30  ;;  %v961_v0 = vmul.f32 0.6931472, %v1356_v32  ;;  %v933_v35 = vpop.xlane.xlu1 %932 }
 0x3f1   : > { %1000 = vst [vmem:[%s1697_s20 + $0x30] sm:$0xff] %v984_v4  ;;  %v955_v36 = vmul.f32 0.6931472, %v1358_v33  ;;  %1367 = vlog2.f32 %v933_v35  ;;  %v939_v37 = vpop.xlane.xlu0 %938 }
 0x3f2   : > { %v985_v38 = vsub.f32 %v1654_v12, %v961_v0  ;;  %1369 = vlog2.f32 %v939_v37 }
 0x3f3   : > { %v1360_v40 = vpop.eup %1359  ;;  %v982_v6 = vsub.f32 %v1658_v16, %v955_v36 }
 0x3f4   : > { %v1362_v41 = vpop.eup %1361  ;;  %1001 = vst [vmem:[%s1697_s20 + $0x38] sm:$0xff] %v985_v38  ;;  %v957_v10 = vmul.f32 0.6931472, %v1360_v40  ;;  %v941_v42 = vpop.xlane.xlu1 %940 }
 0x3f5   : > { %998 = vst [vmem:[%s1697_s20 + $0x20] sm:$0xff] %v982_v6  ;;  %v967_v43 = vmul.f32 0.6931472, %v1362_v41  ;;  %1371 = vlog2.f32 %v941_v42  ;;  %v943_v45 = vpop.xlane.xlu0 %942 }
 0x3f6   : > { %v983_v46 = vsub.f32 %v1660_v19, %v957_v10  ;;  %1373 = vlog2.f32 %v943_v45 }
 0x3f7   : > { %v1364_v12 = vpop.eup %1363  ;;  %v988_v48 = vsub.f32 %v1664_v24, %v967_v43 }
 0x3f8   : > { %v1366_v49 = vpop.eup %1365  ;;  %999 = vst [vmem:[%s1697_s20 + $0x28] sm:$0xff] %v983_v46  ;;  %v969_v16 = vmul.f32 0.6931472, %v1364_v12  ;;  %v945_v50 = vpop.xlane.xlu1 %944 }
 0x3f9   : > { %1004 = vst [vmem:[%s1697_s20 + $0x50] sm:$0xff] %v988_v48  ;;  %v963_v51 = vmul.f32 0.6931472, %v1366_v49  ;;  %1375 = vlog2.f32 %v945_v50 }
 0x3fa   : > { %v989_v53 = vsub.f32 %v1666_v27, %v969_v16 }
 0x3fb   : > { %v1368_v54 = vpop.eup %1367  ;;  %v986_v19 = vsub.f32 %v1670_v31, %v963_v51 }
 0x3fc   : > { %v1370_v55 = vpop.eup %1369  ;;  %1005 = vst [vmem:[%s1697_s20 + $0x58] sm:$0xff] %v989_v53  ;;  %v965_v56 = vmul.f32 0.6931472, %v1368_v54 }
 0x3fd   : > { %1002 = vst [vmem:[%s1697_s20 + $0x40] sm:$0xff] %v986_v19  ;;  %v971_v24 = vmul.f32 0.6931472, %v1370_v55 }
 0x3fe   : > { %v987_v57 = vsub.f32 %v1673_v34, %v965_v56 }
 0x3ff   : > { %v1372_v58 = vpop.eup %1371  ;;  %v990_v59 = vsub.f32 %v1678_v39, %v971_v24 }
 0x400   : > { %v1374_v60 = vpop.eup %1373  ;;  %1003 = vst [vmem:[%s1697_s20 + $0x48] sm:$0xff] %v987_v57  ;;  %v973_v27 = vmul.f32 0.6931472, %v1372_v58 }
 0x401   : > { %1006 = vst [vmem:[%s1697_s20 + $0x60] sm:$0xff] %v990_v59  ;;  %v975_v31 = vmul.f32 0.6931472, %v1374_v60 }
 0x402   : > { %v991_v61 = vsub.f32 %v1682_v44, %v973_v27 }
 0x403   : > { %v1376_v63 = vpop.eup %1375  ;;  %v992_v1 = vsub.f32 %v1686_v47, %v975_v31 }
 0x404   : > { %1007 = vst [vmem:[%s1697_s20 + $0x68] sm:$0xff] %v991_v61  ;;  %v977_v34 = vmul.f32 0.6931472, %v1376_v63 }
 0x405   : > { %1008 = vst [vmem:[%s1697_s20 + $0x70] sm:$0xff] %v992_v1 }
 0x406   : > { %v993_v39 = vsub.f32 %v1690_v52, %v977_v34 }
 0x408   : > { %1009 = vst [vmem:[%s1697_s20 + $0x78] sm:$0xff] %v993_v39 }
 0x409   : > { %1390 = shalt.err (!%p1387_p3)
}
 0x40a   : > { %s1391_s16 = scalar_lea.hbm %s1733_s9, 2048  ;;  %s1395_s19 = scalar_lea.hbm %s1789_s7, 8192 }
 0x40b   : > { %p1392_p4 = scmp.ne.s32.totalorder %s1733_s9, %s1391_s16  ;;  %p1396_p9 = scmp.lt.u32.totalorder %s1733_s9, %s1789_s7 }
 0x40c   : > { %p1397_p10 = scmp.lt.u32.totalorder %s1395_s19, %s1391_s16  ;;  %p1399_p12 = scmp.lt.u32.totalorder %s1391_s16, %s1733_s9 }
 0x40d   : > { %p1393_p7 = pnand %p1392_p4, %p1522_p5 }
 0x40e   : > { %p1398_p11 = por %p1397_p10, %p1396_p9 }
 0x40f   : > { %p1394_p8 = pneg %p1393_p7 }
 0x410   : > { %p1400_p13 = por %p1399_p12, %p1398_p11 }
 0x412   : > { %p1401_p0 = pnand %p1400_p13, %p1394_p8 }
 0x414   : > { %1404 = shalt.err (!%p1401_p0)
}
 0x415   : > { %s1442_s23 = smov 128   ;;  %s1443_s29 = smov 8  }
 0x416   : > { %1254 = dma.vmem_to_hbm [thread:$0]  (%p1522_p5), %s1735_s22, 2048, %s1733_s9, %s1741_s28, %s1442_s23, %s1442_s23, %s1443_s29  }
 0x417 PF: > { %p1260_p1 = scmp.ge.s32.totalorder %s1439_s27, 2  ;;  %s1039_s8 = sand.u32 1, %s1427_s24  }
 0x418   : > { %s1040_s13 = scalar_lea.sflag [#allocation3], %s1039_s8 }
 0x419   : > { %p1257_p2 = pnand %p1260_p1, %p1526_p6 }
 0x41b   : > { %1422 = dma.done.wait (!%p1257_p2), %s1040_s13, 2048  }
 0x41c   : > { %1424 = vsyncadd (!%p1257_p2), %s1040_s13, 4294965248  ;;  %p17_p3 = scmp.ge.s32.totalorder %s1509_s30, 6   ;;  %s1792_s24 = smov %s1431_s25 }
 0x41d   : > { %s1793_s25 = smov %s1435_s26  ;;  %s1794_s26 = smov %s1520_s10 }
 0x41e   : > { %s1795_s27 = smov %s1509_s30  ;;  %19 = sbr.rel (!%p17_p3) target bundleno = 3 (0x3), region = 83 }
 0x425   :  { %1045 = vsyncpa [#allocation3], 1 }
 0x426   :  { %1047 = vsyncpa [#allocation3 + $0x1], 1 }

</bundles_post_ra>
